<compile_context>
chip_gen: v5e
topology: v5e:2x2
jax: 0.10.0
libtpu: 0.0.40
codegen_flags: <defaults>
</compile_context>

<pallas_src>
import jax
import jax.numpy as jnp
from jax.experimental import pallas as pl
from jax.experimental.pallas import tpu as pltpu


def _round_up(x, m):
    return ((x + m - 1) // m) * m


def roberta_head_kernel(x_ref, w1_ref, b1_ref, w2_ref, b2_ref, o_ref):
    # x_ref:  [TB, H]     in dtype   w1_ref: [H, H]       bf16
    # b1_ref: [1, H]      f32        w2_ref: [H, L_pad]   bf16
    # b2_ref: [1, L_pad]  f32        o_ref:  [TB, L_pad]  out dtype
    # In-kernel cast of x to bf16 (cheap VPU op; avoids an extra HBM pass).
    x = x_ref[...].astype(jnp.bfloat16)
    # dense: x @ W1 on the MXU (bf16 operands, f32 accumulate); bias+tanh f32.
    h = jnp.dot(x, w1_ref[...], preferred_element_type=jnp.float32)
    h = jnp.tanh(h + b1_ref[...])
    # out_proj: h @ W2 + b2 (only the dot operand is quantized to bf16).
    out = jnp.dot(h.astype(jnp.bfloat16), w2_ref[...],
                  preferred_element_type=jnp.float32)
    o_ref[...] = (out + b2_ref[...]).astype(o_ref.dtype)


def roberta_head(x, w1, b1, w2, b2, *, block_b=1024):
    """x: [B, H]; w1: [H, H] (in->out layout); b1: [H]; w2: [H, L]; b2: [L].

    Returns [B, L].  Dropout is treated as identity (eval mode).
    Pass w1 (and optionally w2) pre-cast to bf16 to avoid a per-call cast.
    """
    B, H = x.shape
    L = w2.shape[1]
    out_dtype = x.dtype

    # Lane-dense output width: pad labels to a multiple of 128 (w2/b2 only --
    # tiny arrays; x itself is never padded or copied).
    L_pad = _round_up(L, 128)

    # Batch tile: multiple of 8 sublanes, capped by block_b, and sized so the
    # grid has >=2 steps once B is large enough (keeps both v7x TCs busy while
    # still reaching block_b-sized tiles on big batches for v6e).
    TB = min(block_b, _round_up(pl.cdiv(B, 2), 256), _round_up(B, 8))
    grid = (pl.cdiv(B, TB),)  # partial last block: OOB rows are masked on store

    # Weights: bf16 MXU operands (cast only if caller didn't pre-cast);
    # biases f32.  w2/b2 padding is O(H*128) -- negligible.
    w1_bf = w1 if w1.dtype == jnp.bfloat16 else w1.astype(jnp.bfloat16)
    w2_p = jnp.pad(w2.astype(jnp.bfloat16), ((0, 0), (0, L_pad - L)))
    b1_2d = b1.astype(jnp.float32).reshape(1, H)
    b2_2d = jnp.pad(b2.astype(jnp.float32), (0, L_pad - L)).reshape(1, L_pad)

    # VMEM budget: actual footprint + 50% slack, never the full 64 MiB (v7x).
    in_bytes = jnp.dtype(x.dtype).itemsize
    out_bytes = jnp.dtype(out_dtype).itemsize
    resident = (H * H + H * L_pad) * 2 + (H + L_pad) * 4          # weights/biases
    per_step = (2 * TB * H * in_bytes          # x tile, double-buffered
                + 2 * TB * L_pad * out_bytes   # out tile, double-buffered
                + TB * H * (4 + 2 + 2)         # f32 h + bf16 x/h intermediates
                + TB * L_pad * 4)              # f32 out intermediate
    vmem_bytes = int(1.5 * (resident + per_step)) + (4 << 20)
    vmem_bytes = max(16 << 20, min(vmem_bytes, 48 << 20))

    cost = pl.CostEstimate(
        flops=2 * B * H * H + 2 * B * H * L_pad,
        transcendentals=B * H,
        bytes_accessed=(B * H * in_bytes
                        + w1_bf.size * 2 + w2_p.size * 2
                        + b1_2d.size * 4 + b2_2d.size * 4
                        + B * L_pad * out_bytes),
    )

    out = pl.pallas_call(
        roberta_head_kernel,
        out_shape=jax.ShapeDtypeStruct((B, L_pad), out_dtype),
        grid_spec=pltpu.PrefetchScalarGridSpec(
            num_scalar_prefetch=0,
            grid=grid,
            in_specs=[
                # x: tiled on batch, default double-buffering (overlaps DMA).
                pl.BlockSpec((TB, H), lambda i: (i, 0)),
                # Weights/biases: constant index_map -> VMEM-resident; a
                # single buffer each (the default 2nd buffer is wasted VMEM).
                pl.BlockSpec((H, H), lambda i: (0, 0),
                             pipeline_mode=pl.Buffered(1)),
                pl.BlockSpec((1, H), lambda i: (0, 0),
                             pipeline_mode=pl.Buffered(1)),
                pl.BlockSpec((H, L_pad), lambda i: (0, 0),
                             pipeline_mode=pl.Buffered(1)),
                pl.BlockSpec((1, L_pad), lambda i: (0, 0),
                             pipeline_mode=pl.Buffered(1)),
            ],
            out_specs=pl.BlockSpec((TB, L_pad), lambda i: (i, 0)),
        ),
        compiler_params=pltpu.CompilerParams(
            dimension_semantics=("parallel",),  # batch tiles independent
            vmem_limit_bytes=vmem_bytes,
        ),
        cost_estimate=cost,
    )(x, w1_bf, b1_2d, w2_p, b2_2d)

    # Slice the padded label lanes back off (rows are already exactly B).
    return out[:, :L]


if __name__ == "__main__":
    hidden_size = 32
    num_labels = 4
    batch = 8

    key = jax.random.PRNGKey(0)
    kx, kw1, kb1, kw2, kb2 = jax.random.split(key, 5)

    x = jax.random.normal(kx, (batch, hidden_size), dtype=jnp.float32)
    # Deterministic parameter init (torch.nn.Linear-style uniform bounds).
    bound = 1.0 / (hidden_size ** 0.5)
    w1 = jax.random.uniform(kw1, (hidden_size, hidden_size),
                            minval=-bound, maxval=bound, dtype=jnp.float32)
    b1 = jax.random.uniform(kb1, (hidden_size,),
                            minval=-bound, maxval=bound, dtype=jnp.float32)
    w2 = jax.random.uniform(kw2, (hidden_size, num_labels),
                            minval=-bound, maxval=bound, dtype=jnp.float32)
    b2 = jax.random.uniform(kb2, (hidden_size * 0 + num_labels,),
                            minval=-bound, maxval=bound, dtype=jnp.float32)

    # Cast the big weight to bf16 ONCE, outside the per-call path (the wrapper
    # accepts it as-is; f32 would also be accepted and cast per call).
    w1_bf16 = w1.astype(jnp.bfloat16)

    out = jax.block_until_ready(roberta_head(x, w1_bf16, b1, w2, b2))
    assert out.shape == (batch, num_labels)

    # Reference mirroring the kernel's bf16 dot operands with f32 accumulate.
    xb = x.astype(jnp.bfloat16).astype(jnp.float32)
    w1b = w1.astype(jnp.bfloat16).astype(jnp.float32)
    w2b = w2.astype(jnp.bfloat16).astype(jnp.float32)
    h = jnp.tanh(xb @ w1b + b1)
    ref = h.astype(jnp.bfloat16).astype(jnp.float32) @ w2b + b2
    assert jnp.allclose(out, ref, atol=2e-3, rtol=2e-3), \
        float(jnp.max(jnp.abs(out - ref)))

    # Sanity vs the pure-f32 module semantics (loose: bf16 operand quantization).
    ref_f32 = jnp.tanh(x @ w1 + b1) @ w2 + b2
    assert jnp.allclose(out, ref_f32, atol=3e-2, rtol=3e-2)

    print("KERNEL_OK")
</pallas_src>

<mosaic_0001>
module attributes {stable_mosaic.version = 11 : i64} {
  func.func @roberta_head_kernel(%arg0: i32, %arg1: memref<8x32xf32, #tpu.memory_space<vmem>>, %arg2: memref<32x32xbf16, #tpu.memory_space<vmem>>, %arg3: memref<1x32xf32, #tpu.memory_space<vmem>>, %arg4: memref<32x128xbf16, #tpu.memory_space<vmem>>, %arg5: memref<1x128xf32, #tpu.memory_space<vmem>>, %arg6: memref<8x128xf32, #tpu.memory_space<vmem>>) attributes {dimension_semantics = [#tpu.dimension_semantics<parallel>], iteration_bounds = array<i64: 1>, scalar_prefetch = 0 : i64, scratch_operands = 0 : i64, tpu.core_type = #tpu.core_type<tc>, window_params = [{transform_indices = @transform_0, window_bounds = array<i64: 8, 32>}, {pipeline_mode = #tpu.pipeline_mode<synchronous>, transform_indices = @transform_1, window_bounds = array<i64: 32, 32>}, {pipeline_mode = #tpu.pipeline_mode<synchronous>, transform_indices = @transform_2, window_bounds = array<i64: 1, 32>}, {pipeline_mode = #tpu.pipeline_mode<synchronous>, transform_indices = @transform_3, window_bounds = array<i64: 32, 128>}, {pipeline_mode = #tpu.pipeline_mode<synchronous>, transform_indices = @transform_4, window_bounds = array<i64: 1, 128>}, {transform_indices = @transform_5, window_bounds = array<i64: 8, 128>}]} {
    %c0 = arith.constant 0 : index
    %c0_0 = arith.constant 0 : index
    %0 = vector.load %arg1[%c0, %c0_0] : memref<8x32xf32, #tpu.memory_space<vmem>>, vector<8x32xf32>
    %1 = arith.truncf %0 : vector<8x32xf32> to vector<8x32xbf16>
    %c0_1 = arith.constant 0 : index
    %c0_2 = arith.constant 0 : index
    %2 = vector.load %arg2[%c0_1, %c0_2] : memref<32x32xbf16, #tpu.memory_space<vmem>>, vector<32x32xbf16>
    %cst = arith.constant dense<0.000000e+00> : vector<8x32xf32>
    %3 = tpu.matmul %1, %2, %cst {dimension_numbers = #tpu.dot_dimension_numbers<[1], [0], [0], [1], [0, 0, 1, 1], [], []>} : vector<8x32xbf16>, vector<32x32xbf16>, vector<8x32xf32> -> vector<8x32xf32>
    %c0_3 = arith.constant 0 : index
    %c0_4 = arith.constant 0 : index
    %4 = vector.load %arg3[%c0_3, %c0_4] : memref<1x32xf32, #tpu.memory_space<vmem>>, vector<1x32xf32>
    %5 = vector.broadcast %4 : vector<1x32xf32> to vector<8x32xf32>
    %6 = arith.addf %3, %5 : vector<8x32xf32>
    %7 = math.tanh %6 : vector<8x32xf32>
    %8 = arith.truncf %7 : vector<8x32xf32> to vector<8x32xbf16>
    %c0_5 = arith.constant 0 : index
    %c0_6 = arith.constant 0 : index
    %9 = vector.load %arg4[%c0_5, %c0_6] : memref<32x128xbf16, #tpu.memory_space<vmem>>, vector<32x128xbf16>
    %cst_7 = arith.constant dense<0.000000e+00> : vector<8x128xf32>
    %10 = tpu.matmul %8, %9, %cst_7 {dimension_numbers = #tpu.dot_dimension_numbers<[1], [0], [0], [1], [0, 0, 1, 1], [], []>} : vector<8x32xbf16>, vector<32x128xbf16>, vector<8x128xf32> -> vector<8x128xf32>
    %c0_8 = arith.constant 0 : index
    %c0_9 = arith.constant 0 : index
    %11 = vector.load %arg5[%c0_8, %c0_9] : memref<1x128xf32, #tpu.memory_space<vmem>>, vector<1x128xf32>
    %12 = vector.broadcast %11 : vector<1x128xf32> to vector<8x128xf32>
    %13 = arith.addf %10, %12 : vector<8x128xf32>
    %c0_10 = arith.constant 0 : index
    %c0_11 = arith.constant 0 : index
    %14 = vector.load %arg6[%c0_10, %c0_11] : memref<8x128xf32, #tpu.memory_space<vmem>>, vector<8x128xf32>
    tpu.vector_store %arg6[%c0_10, %c0_11], %13 {strides = array<i32>} : memref<8x128xf32, #tpu.memory_space<vmem>>, vector<8x128xf32>,
    return
  }
  func.func @transform_0(%arg0: i32) -> (i32, i32) {
    %c0_i32 = arith.constant 0 : i32
    %c0_i32_0 = arith.constant 0 : i32
    return %arg0, %c0_i32 : i32, i32
  }
  func.func @transform_1(%arg0: i32) -> (i32, i32) {
    %c0_i32 = arith.constant 0 : i32
    %c0_i32_0 = arith.constant 0 : i32
    %c0_i32_1 = arith.constant 0 : i32
    return %c0_i32, %c0_i32_0 : i32, i32
  }
  func.func @transform_2(%arg0: i32) -> (i32, i32) {
    %c0_i32 = arith.constant 0 : i32
    %c0_i32_0 = arith.constant 0 : i32
    %c0_i32_1 = arith.constant 0 : i32
    return %c0_i32, %c0_i32_0 : i32, i32
  }
  func.func @transform_3(%arg0: i32) -> (i32, i32) {
    %c0_i32 = arith.constant 0 : i32
    %c0_i32_0 = arith.constant 0 : i32
    %c0_i32_1 = arith.constant 0 : i32
    return %c0_i32, %c0_i32_0 : i32, i32
  }
  func.func @transform_4(%arg0: i32) -> (i32, i32) {
    %c0_i32 = arith.constant 0 : i32
    %c0_i32_0 = arith.constant 0 : i32
    %c0_i32_1 = arith.constant 0 : i32
    return %c0_i32, %c0_i32_0 : i32, i32
  }
  func.func @transform_5(%arg0: i32) -> (i32, i32) {
    %c0_i32 = arith.constant 0 : i32
    %c0_i32_0 = arith.constant 0 : i32
    return %arg0, %c0_i32 : i32, i32
  }
}

</mosaic_0001>

<bundles_post_ra>
// kernel: tpu_custom_call.1
= control target key start
LH: loop header
LB: loop body
LE: loop exit
PB: predicated region body
PF: predicated region fallthrough
CT: control target
= control target key end

     0   :  { %10 = vsyncpa [#allocation3], 0  ;;  %s351_s0 = inlined_call_operand.hbm [shape: f32[8,32], index: 0, kind: input, shape index: {}]   ;;  %s352_s1 = inlined_call_operand.hbm [shape: bf16[32,32], index: 1, kind: input, shape index: {}]   ;;  %s353_s2 = inlined_call_operand.vmem [shape: f32[1,32], index: 2, kind: input, shape index: {}]   ;;  %s354_s3 = inlined_call_operand.hbm [shape: bf16[32,128], index: 3, kind: input, shape index: {}]   ;;  %s355_s4 = inlined_call_operand.vmem [shape: f32[1,128], index: 4, kind: input, shape index: {}]   ;;  %s356_s5 = inlined_call_operand.hbm [shape: f32[8,128], index: 5, kind: output, shape index: {}]  }
   0x1   :  { %11 = vsyncpa [#allocation6], 0  ;;  %s28_s20 = sshll.u32 %s352_s1, 4  ;;  %s29_s20 = int_to_ptr.hbm [resolvable:$true] %s28_s20 }
   0x2   :  { %12 = vsyncpa [#allocation4], 0  ;;  %s297_s21 = smov [#allocation5]   ;;  %s18_s25 = sshll.u32 %s351_s0, 4  ;;  %s19_s25 = int_to_ptr.hbm [resolvable:$true] %s18_s25 }
   0x3   :  { %s30_s22 = sshll.u32 %s297_s21, 4  ;;  %s298_s26 = smov 64   ;;  %s31_s22 = int_to_ptr.vmem [resolvable:$true] %s30_s22 }
   0x4   :  { %s299_s27 = smov 4   ;;  %s300_s28 = smov [#allocation2]  }
   0x5   :  { %36 = dma.hbm_to_vmem [thread:$0]  %s29_s20, 256, %s31_s22, [#allocation6], %s298_s26, %s298_s26, %s299_s27  }
   0x6   :  { %s20_s29 = sshll.u32 %s300_s28, 4  ;;  %s43_s7 = sshll.u32 %s354_s3, 4  ;;  %s21_s29 = int_to_ptr.vmem [resolvable:$true] %s20_s29  ;;  %s44_s7 = int_to_ptr.hbm [resolvable:$true] %s43_s7 }
   0x7   :  { %23 = dma.hbm_to_vmem [thread:$0]  %s19_s25, 128, %s21_s29, [#allocation3]  }
   0x8   :  { %s301_s1 = smov [#allocation7]  }
   0x9   :  { %s45_s8 = sshll.u32 %s301_s1, 4  ;;  %s46_s8 = int_to_ptr.vmem [resolvable:$true] %s45_s8 }
   0xa   :  { %51 = dma.hbm_to_vmem [thread:$0]  %s44_s7, 256, %s46_s8, [#allocation6], %s298_s26, %s298_s26, %s299_s27  }
   0xb   :  { %291 = dma.done.wait [#allocation3], 128  }
   0xc   :  { %292 = vsyncadd [#allocation3], 4294967168 }
   0xd   :  { %293 = dma.done.wait [#allocation6], 512  }
   0xe   :  { %294 = vsyncadd [#allocation6], 4294966784  ;;  %v182_v0 = vld [vmem:[#allocation5 + $0x8] sm:$0xff]  ;;  %v181_v1 = vld [vmem:[#allocation5] sm:$0xff]  ;;  %vm89_vm0 = vcmask 261120   ;;  %s302_s11 = smov [#allocation8]  }
   0xf   :  { %99 = vmatpush.bf16.msra.mxu0 %v182_v0  ;;  %v67_v2 = vld [vmem:[#allocation2] sm:$0xff]  ;;  %v183_v5 = vld [vmem:[#allocation7] sm:$0xff]  ;;  %s150_s12 = sshll.u32 %s302_s11, 4  ;;  %s152_s15 = sshll.u32 %s356_s5, 4  ;;  %s151_s12 = int_to_ptr.vmem [resolvable:$true] %s150_s12  ;;  %s153_s15 = int_to_ptr.hbm [resolvable:$true] %s152_s15 }
  0x10   :  { %v68_v3 = vpack.c.bf16 %v67_v2, %v67_v2  ;;  %v184_v4 = vld [vmem:[#allocation7 + $0x8] sm:$0xff] }
  0x11   :  { %137 = vmatpush.bf16.msra.mxu1 %v184_v4  ;;  %v191_v6 = vld [vmem:[%s353_s2] ss:$0 sm:$0xff] }
  0x12   :  { %v192_v12 = vld [vmem:[%s355_s4] ss:$0 sm:$0xff] }
  0x13   :  { %100 = vmatpush.bf16.msra.mxu0 %v181_v1 }
  0x15   :  { %138 = vmatpush.bf16.msra.mxu1 %v183_v5 }
  0x16   :  { %171 = vmatmul.msk.bf16.vlgmr.msra.gmra.mxu0 %vm89_vm0, %v68_v3 }
  0x93   :  { %v102_v7 = vpop.f32.mrf.mxu0 }
  0x94   :  { %v103_v8 = vadd.f32 %v191_v6, %v102_v7 }
  0x96   :  { %193 = vtanh.f32 %v103_v8 }
  0x9b   :  { %v104_v9 = vpop.f32.mrf.mxu0 }
  0x9c   :  { %v194_v10 = vpop.eup %193 }
  0x9d   :  { %v107_v11 = vpack.c.bf16 %v194_v10, %v194_v10 }
  0x9f   :  { %180 = vmatmul.msk.bf16.vlgmr.msra.gmra.mxu1 %vm89_vm0, %v107_v11 }
 0x11c   :  { %v140_v13 = vpop.f32.mrf.mxu1 }
 0x11d   :  { %v141_v14 = vadd.f32 %v192_v12, %v140_v13 }
 0x11f   :  { %144 = vst [vmem:[#allocation8] sm:$0xff] %v141_v14 }
 0x120   :  { %155 = dma.vmem_to_hbm [thread:$0]  %s151_s12, 128, %s153_s15, [#allocation4]  }
 0x124   :  { %v142_v15 = vpop.f32.mrf.mxu1 }
 0x125   :  { %295 = dma.done.wait [#allocation4], 128  }
 0x126   :  { %296 = vsyncadd [#allocation4], 4294967168 }
 0x127   :  { %160 = vsyncpa [#allocation3], 1 }
 0x128   :  { %161 = vsyncpa [#allocation6], 1 }
 0x129   :  { %162 = vsyncpa [#allocation4], 1 }

</bundles_post_ra>
